<compile_context>
chip_gen: v5e
topology: v5e:2x2
jax: 0.10.0
libtpu: 0.0.40
codegen_flags: <defaults>
</compile_context>

<pallas_src>
import jax
import jax.numpy as jnp
import numpy as np
from jax import lax
from jax.experimental import pallas as pl
from jax.experimental.pallas import tpu as pltpu


def _embedding_kernel(
    x_ref,      # (1, C_in, N)      raw input, channels-first
    nbr_ref,    # (1, 1, (K-1)*N)   int32 neighbor indices, slots 1..K-1 flattened
    wc_ref,     # (2*C_out, C_in)   rows [:C_out]  = folded point->output weight
                #                   rows [C_out:]  = folded neighbor projection weight
    c2_ref,     # (C_out, 1)        folded BN2/BN3 constant of the neighbor branch
    w2b_ref,    # (C_out, C_out)    conv2 second 1x1 weight, (out, in)
    wfn_ref,    # (C_out, C_out)    final-conv weight for the neighbor half, (out, in)
    bt_ref,     # (C_out, 1)        total folded output bias
    o_ref,      # (1, C_out, N)
):
    C_out = o_ref.shape[1]
    N = o_ref.shape[2]

    x = x_ref[0]                                            # (C_in, N)

    # One matmul produces both the point-branch output contribution and the
    # neighbor-branch projection (BN1 / conv1 / wf_p / BN2 / BN3 pre-folded).
    combined = jnp.dot(wc_ref[...], x,
                       preferred_element_type=jnp.float32)  # (2*C_out, N)
    point_out = combined[:C_out, :]                         # (C_out, N)
    proj = combined[C_out:, :]                              # (C_out, N)

    # Batched one-hot gather over all K-1 neighbor slots in a single MXU call:
    # onehot[j, k*N + n] = 1 iff j == neighbors[k+1, n]
    nbr = nbr_ref[0]                                        # (1, (K-1)*N)
    KN = nbr.shape[1]
    K1 = KN // N
    row_src = lax.broadcasted_iota(jnp.int32, (N, KN), 0)
    onehot = (row_src == nbr).astype(jnp.float32)           # (N, (K-1)*N)

    gathered = jnp.dot(proj, onehot,
                       preferred_element_type=jnp.float32)  # (C_out, (K-1)*N)

    # h_k = ReLU(proj[:, nbr_k] - proj + c2)   (BN1 shift cancels, BN2/BN3 folded)
    proj_tiled = jnp.concatenate([proj] * K1, axis=1)       # lane-aligned tiling
    h = jnp.maximum(gathered - proj_tiled + c2_ref[...], 0.0)

    # Single w2b matmul over all neighbor slots, then max over the slot axis
    # via lane-aligned static slices.
    ne = jnp.dot(w2b_ref[...], h,
                 preferred_element_type=jnp.float32)        # (C_out, (K-1)*N)
    neigh_max = ne[:, 0:N]
    for k in range(1, K1):
        neigh_max = jnp.maximum(neigh_max, ne[:, k * N:(k + 1) * N])

    # Final output: point contribution (already in output space) + folded
    # neighbor half of the final conv + total bias.
    y = point_out + jnp.dot(wfn_ref[...], neigh_max,
                            preferred_element_type=jnp.float32) + bt_ref[...]
    o_ref[0] = y.astype(o_ref.dtype)


def embedding_forward(x_ncl, neighbors, params):
    """x_ncl: (B, C_in, N) f32. neighbors: (B, K, N) int. Returns (B, C_out, N)."""
    B, C_in, N = x_ncl.shape
    K = neighbors.shape[1]
    assert K >= 2, "Embedding.forward requires at least one neighbor slot (K >= 2)"
    C_out = params["w1"].shape[1]
    KN = (K - 1) * N

    bn1_s = params["bn1_scale"]                 # (1, C_in)
    bn1_b = params["bn1_shift"]                 # (1, C_in)

    # --- fold BN2 / BN3 into the conv2a weight (eval-mode algebra) ----------
    # ((g - x_bn)*bn2s + bn2b) @ w2a * bn3s + bn3b = (g - x_bn) @ W2a_full + c2
    w2a_full = (params["bn2_scale"].reshape(C_in, 1) * params["w2a"]) \
        * params["bn3_scale"].reshape(1, C_out)                      # (C_in, C_out)
    c2 = (params["bn2_shift"] @ params["w2a"]) * params["bn3_scale"] \
        + params["bn3_shift"]                                        # (1, C_out)

    # --- fold BN1 + conv1 + final-conv(point half) into one weight ----------
    # wf_p^T @ (w1^T @ (x*s + b) + b1) = ((w1@wf_p)^T * s) @ x + const
    w_point = (params["w1"] @ params["wf_p"]).T * bn1_s              # (C_out, C_in)
    # BN1 shift cancels in (gathered - proj); only the scale survives.
    w_nproj = w2a_full.T * bn1_s                                     # (C_out, C_in)
    wc = jnp.concatenate([w_point, w_nproj], axis=0)                 # (2*C_out, C_in)

    # Total output bias: BN1 shift routed through the point branch + conv1
    # bias through wf_p + final bias.
    b_total = (bn1_b @ (params["w1"] @ params["wf_p"])
               + params["b1"] @ params["wf_p"]
               + params["bf"]).T                                     # (C_out, 1)

    c2c = c2.T                       # (C_out, 1)
    w2bT = params["w2b"].T           # (C_out, C_out)
    wfnT = params["wf_n"].T          # (C_out, C_out)

    # Flatten neighbor slots 1..K-1 along the lane axis in the wrapper so the
    # kernel never reshapes.
    nbr_flat = neighbors[:, 1:, :].astype(jnp.int32).reshape(B, 1, KN)

    def full(arr):
        nd = arr.ndim
        return pl.BlockSpec(arr.shape, lambda b, _n=nd: (0,) * _n)

    out = pl.pallas_call(
        _embedding_kernel,
        out_shape=jax.ShapeDtypeStruct((B, C_out, N), jnp.float32),
        grid_spec=pltpu.PrefetchScalarGridSpec(
            num_scalar_prefetch=0,
            grid=(B,),
            in_specs=[
                pl.BlockSpec((1, C_in, N), lambda b: (b, 0, 0)),
                pl.BlockSpec((1, 1, KN), lambda b: (b, 0, 0)),
                full(wc), full(c2c), full(w2bT), full(wfnT), full(b_total),
            ],
            out_specs=pl.BlockSpec((1, C_out, N), lambda b: (b, 0, 0)),
        ),
        compiler_params=pltpu.CompilerParams(
            dimension_semantics=("parallel",),
        ),
    )(x_ncl, nbr_flat, wc, c2c, w2bT, wfnT, b_total)
    return out


def _reference(x_ncl, neighbors, params):
    """Pure-JAX reference, channels-last internally (eval-mode BN, unfused)."""
    x = jnp.transpose(x_ncl, (0, 2, 1))               # (B, N, C_in)
    K = neighbors.shape[1]
    x_bn = x * params["bn1_scale"] + params["bn1_shift"]
    point = x_bn @ params["w1"] + params["b1"]
    outs = []
    for k in range(1, K):
        idx = neighbors[:, k, :]                      # (B, N)
        g = jnp.take_along_axis(x_bn, idx[:, :, None], axis=1)
        diff = g - x_bn
        h = diff * params["bn2_scale"] + params["bn2_shift"]
        h = h @ params["w2a"]
        h = h * params["bn3_scale"] + params["bn3_shift"]
        h = jnp.maximum(h, 0.0)
        h = h @ params["w2b"]
        outs.append(h)
    m = jnp.max(jnp.stack(outs, axis=0), axis=0)
    y = point @ params["wf_p"] + m @ params["wf_n"] + params["bf"]
    return jnp.transpose(y, (0, 2, 1))                # (B, C_out, N)


def _init_params(key, C_in, C_out):
    """Deterministic synthetic parameters (BatchNorm folded to scale/shift)."""
    ks = jax.random.split(key, 16)
    eps = 1e-5

    def bn(kg, kb, km, kv, C):
        gamma = jax.random.normal(kg, (1, C), jnp.float32) * 0.1 + 1.0
        beta = jax.random.normal(kb, (1, C), jnp.float32) * 0.1
        mean = jax.random.normal(km, (1, C), jnp.float32) * 0.1
        var = jax.random.uniform(kv, (1, C), jnp.float32, 0.5, 1.5)
        scale = gamma / jnp.sqrt(var + eps)
        shift = beta - scale * mean
        return scale, shift

    bn1_scale, bn1_shift = bn(ks[0], ks[1], ks[2], ks[3], C_in)
    bn2_scale, bn2_shift = bn(ks[4], ks[5], ks[6], ks[7], C_in)
    bn3_scale, bn3_shift = bn(ks[8], ks[9], ks[10], ks[11], C_out)

    # Weights stored already transposed to (in, out) for the reference.
    w1 = jax.random.normal(ks[12], (C_in, C_out), jnp.float32) * 0.2
    b1 = jax.random.normal(ks[13], (1, C_out), jnp.float32) * 0.1
    w2a = jax.random.normal(ks[14], (C_in, C_out), jnp.float32) * 0.2
    w2b = jax.random.normal(ks[15], (C_out, C_out), jnp.float32) * 0.1
    kf = jax.random.split(ks[15], 4)
    wf_p = jax.random.normal(kf[0], (C_out, C_out), jnp.float32) * 0.1
    wf_n = jax.random.normal(kf[1], (C_out, C_out), jnp.float32) * 0.1
    bf = jax.random.normal(kf[2], (1, C_out), jnp.float32) * 0.1

    return dict(
        bn1_scale=bn1_scale, bn1_shift=bn1_shift,
        w1=w1, b1=b1,
        bn2_scale=bn2_scale, bn2_shift=bn2_shift,
        w2a=w2a,
        bn3_scale=bn3_scale, bn3_shift=bn3_shift,
        w2b=w2b,
        wf_p=wf_p, wf_n=wf_n, bf=bf,
    )


if __name__ == "__main__":
    B, C_in, C_out, N, K = 2, 4, 32, 128, 8

    key = jax.random.PRNGKey(0)
    kx, kn, kp = jax.random.split(key, 3)

    x = jax.random.normal(kx, (B, C_in, N), jnp.float32)        # PyTorch NCL layout
    neighbors = jax.random.randint(kn, (B, K, N), 0, N, jnp.int32)
    params = _init_params(kp, C_in, C_out)

    out = embedding_forward(x, neighbors, params)
    out = jax.block_until_ready(out)
    assert out.shape == (B, C_out, N), out.shape

    ref = jax.block_until_ready(_reference(x, neighbors, params))
    np.testing.assert_allclose(np.asarray(out), np.asarray(ref), rtol=1e-4, atol=1e-4)

    print("KERNEL_OK")
</pallas_src>

<mosaic_0001>
module attributes {stable_mosaic.version = 11 : i64} {
  func.func @_embedding_kernel(%arg0: i32, %arg1: memref<1x4x128xf32, #tpu.memory_space<vmem>>, %arg2: memref<1x1x896xi32, #tpu.memory_space<vmem>>, %arg3: memref<64x4xf32, #tpu.memory_space<vmem>>, %arg4: memref<32x1xf32, #tpu.memory_space<vmem>>, %arg5: memref<32x32xf32, #tpu.memory_space<vmem>>, %arg6: memref<32x32xf32, #tpu.memory_space<vmem>>, %arg7: memref<32x1xf32, #tpu.memory_space<vmem>>, %arg8: memref<1x32x128xf32, #tpu.memory_space<vmem>>) attributes {dimension_semantics = [#tpu.dimension_semantics<parallel>], iteration_bounds = array<i64: 2>, scalar_prefetch = 0 : i64, scratch_operands = 0 : i64, tpu.core_type = #tpu.core_type<tc>, window_params = [{transform_indices = @transform_0, window_bounds = array<i64: 1, 4, 128>}, {transform_indices = @transform_1, window_bounds = array<i64: 1, 1, 896>}, {pipeline_mode = #tpu.pipeline_mode<synchronous>, transform_indices = @transform_2, window_bounds = array<i64: 64, 4>}, {pipeline_mode = #tpu.pipeline_mode<synchronous>, transform_indices = @transform_3, window_bounds = array<i64: 32, 1>}, {pipeline_mode = #tpu.pipeline_mode<synchronous>, transform_indices = @transform_4, window_bounds = array<i64: 32, 32>}, {pipeline_mode = #tpu.pipeline_mode<synchronous>, transform_indices = @transform_5, window_bounds = array<i64: 32, 32>}, {pipeline_mode = #tpu.pipeline_mode<synchronous>, transform_indices = @transform_6, window_bounds = array<i64: 32, 1>}, {transform_indices = @transform_7, window_bounds = array<i64: 1, 32, 128>}]} {
    %c0 = arith.constant 0 : index
    %c0_0 = arith.constant 0 : index
    %c0_1 = arith.constant 0 : index
    %0 = vector.load %arg1[%c0, %c0_0, %c0_1] : memref<1x4x128xf32, #tpu.memory_space<vmem>>, vector<1x4x128xf32>
    %1 = vector.shape_cast %0 : vector<1x4x128xf32> to vector<4x128xf32>
    %c0_2 = arith.constant 0 : index
    %c0_3 = arith.constant 0 : index
    %2 = vector.load %arg3[%c0_2, %c0_3] : memref<64x4xf32, #tpu.memory_space<vmem>>, vector<64x4xf32>
    %cst = arith.constant dense<0.000000e+00> : vector<64x128xf32>
    %3 = tpu.matmul %2, %1, %cst {dimension_numbers = #tpu.dot_dimension_numbers<[1], [0], [0], [1], [0, 0, 1, 1], [], []>} : vector<64x4xf32>, vector<4x128xf32>, vector<64x128xf32> -> vector<64x128xf32>
    %4 = vector.extract_strided_slice %3 {offsets = [0, 0], sizes = [32, 128], strides = [1, 1]} : vector<64x128xf32> to vector<32x128xf32>
    %5 = vector.extract_strided_slice %3 {offsets = [32, 0], sizes = [32, 128], strides = [1, 1]} : vector<64x128xf32> to vector<32x128xf32>
    %c0_4 = arith.constant 0 : index
    %c0_5 = arith.constant 0 : index
    %c0_6 = arith.constant 0 : index
    %6 = vector.load %arg2[%c0_4, %c0_5, %c0_6] : memref<1x1x896xi32, #tpu.memory_space<vmem>>, vector<1x1x896xi32>
    %7 = vector.shape_cast %6 : vector<1x1x896xi32> to vector<1x896xi32>
    %8 = tpu.iota {dimensions = array<i32: 0>} : vector<128x896xi32>
    %9 = vector.broadcast %7 : vector<1x896xi32> to vector<128x896xi32>
    %10 = arith.cmpi eq, %8, %9 : vector<128x896xi32>
    %11 = arith.extui %10 : vector<128x896xi1> to vector<128x896xi32>
    %12 = arith.sitofp %11 : vector<128x896xi32> to vector<128x896xf32>
    %cst_7 = arith.constant dense<0.000000e+00> : vector<32x896xf32>
    %13 = tpu.matmul %5, %12, %cst_7 {dimension_numbers = #tpu.dot_dimension_numbers<[1], [0], [0], [1], [0, 0, 1, 1], [], []>} : vector<32x128xf32>, vector<128x896xf32>, vector<32x896xf32> -> vector<32x896xf32>
    %14 = tpu.concatenate %5, %5, %5, %5, %5, %5, %5 in 1 : vector<32x128xf32>, vector<32x128xf32>, vector<32x128xf32>, vector<32x128xf32>, vector<32x128xf32>, vector<32x128xf32>, vector<32x128xf32> -> vector<32x896xf32>
    %15 = arith.subf %13, %14 : vector<32x896xf32>
    %c0_8 = arith.constant 0 : index
    %c0_9 = arith.constant 0 : index
    %16 = vector.load %arg4[%c0_8, %c0_9] : memref<32x1xf32, #tpu.memory_space<vmem>>, vector<32x1xf32>
    %17 = vector.broadcast %16 : vector<32x1xf32> to vector<32x896xf32>
    %18 = arith.addf %15, %17 : vector<32x896xf32>
    %cst_10 = arith.constant 0.000000e+00 : f32
    %19 = vector.broadcast %cst_10 : f32 to vector<32x896xf32>
    %20 = arith.maximumf %18, %19 : vector<32x896xf32>
    %c0_11 = arith.constant 0 : index
    %c0_12 = arith.constant 0 : index
    %21 = vector.load %arg5[%c0_11, %c0_12] : memref<32x32xf32, #tpu.memory_space<vmem>>, vector<32x32xf32>
    %cst_13 = arith.constant dense<0.000000e+00> : vector<32x896xf32>
    %22 = tpu.matmul %21, %20, %cst_13 {dimension_numbers = #tpu.dot_dimension_numbers<[1], [0], [0], [1], [0, 0, 1, 1], [], []>} : vector<32x32xf32>, vector<32x896xf32>, vector<32x896xf32> -> vector<32x896xf32>
    %23 = vector.extract_strided_slice %22 {offsets = [0, 0], sizes = [32, 128], strides = [1, 1]} : vector<32x896xf32> to vector<32x128xf32>
    %24 = vector.extract_strided_slice %22 {offsets = [0, 128], sizes = [32, 128], strides = [1, 1]} : vector<32x896xf32> to vector<32x128xf32>
    %25 = arith.maximumf %23, %24 : vector<32x128xf32>
    %26 = vector.extract_strided_slice %22 {offsets = [0, 256], sizes = [32, 128], strides = [1, 1]} : vector<32x896xf32> to vector<32x128xf32>
    %27 = arith.maximumf %25, %26 : vector<32x128xf32>
    %28 = vector.extract_strided_slice %22 {offsets = [0, 384], sizes = [32, 128], strides = [1, 1]} : vector<32x896xf32> to vector<32x128xf32>
    %29 = arith.maximumf %27, %28 : vector<32x128xf32>
    %30 = vector.extract_strided_slice %22 {offsets = [0, 512], sizes = [32, 128], strides = [1, 1]} : vector<32x896xf32> to vector<32x128xf32>
    %31 = arith.maximumf %29, %30 : vector<32x128xf32>
    %32 = vector.extract_strided_slice %22 {offsets = [0, 640], sizes = [32, 128], strides = [1, 1]} : vector<32x896xf32> to vector<32x128xf32>
    %33 = arith.maximumf %31, %32 : vector<32x128xf32>
    %34 = vector.extract_strided_slice %22 {offsets = [0, 768], sizes = [32, 128], strides = [1, 1]} : vector<32x896xf32> to vector<32x128xf32>
    %35 = arith.maximumf %33, %34 : vector<32x128xf32>
    %c0_14 = arith.constant 0 : index
    %c0_15 = arith.constant 0 : index
    %36 = vector.load %arg6[%c0_14, %c0_15] : memref<32x32xf32, #tpu.memory_space<vmem>>, vector<32x32xf32>
    %cst_16 = arith.constant dense<0.000000e+00> : vector<32x128xf32>
    %37 = tpu.matmul %36, %35, %cst_16 {dimension_numbers = #tpu.dot_dimension_numbers<[1], [0], [0], [1], [0, 0, 1, 1], [], []>} : vector<32x32xf32>, vector<32x128xf32>, vector<32x128xf32> -> vector<32x128xf32>
    %38 = arith.addf %4, %37 : vector<32x128xf32>
    %c0_17 = arith.constant 0 : index
    %c0_18 = arith.constant 0 : index
    %39 = vector.load %arg7[%c0_17, %c0_18] : memref<32x1xf32, #tpu.memory_space<vmem>>, vector<32x1xf32>
    %40 = vector.broadcast %39 : vector<32x1xf32> to vector<32x128xf32>
    %41 = arith.addf %38, %40 : vector<32x128xf32>
    %c0_19 = arith.constant 0 : index
    %c0_20 = arith.constant 0 : index
    %c0_21 = arith.constant 0 : index
    %42 = vector.load %arg8[%c0_19, %c0_20, %c0_21] : memref<1x32x128xf32, #tpu.memory_space<vmem>>, vector<1x32x128xf32>
    %43 = vector.shape_cast %42 : vector<1x32x128xf32> to vector<32x128xf32>
    %44 = vector.shape_cast %41 : vector<32x128xf32> to vector<1x32x128xf32>
    tpu.vector_store %arg8[%c0_19, %c0_20, %c0_21], %44 {strides = array<i32>} : memref<1x32x128xf32, #tpu.memory_space<vmem>>, vector<1x32x128xf32>,
    return
  }
  func.func @transform_0(%arg0: i32) -> (i32, i32, i32) {
    %c0_i32 = arith.constant 0 : i32
    %c0_i32_0 = arith.constant 0 : i32
    %c0_i32_1 = arith.constant 0 : i32
    return %arg0, %c0_i32, %c0_i32_0 : i32, i32, i32
  }
  func.func @transform_1(%arg0: i32) -> (i32, i32, i32) {
    %c0_i32 = arith.constant 0 : i32
    %c0_i32_0 = arith.constant 0 : i32
    %c0_i32_1 = arith.constant 0 : i32
    return %arg0, %c0_i32, %c0_i32_0 : i32, i32, i32
  }
  func.func @transform_2(%arg0: i32) -> (i32, i32) {
    %c0_i32 = arith.constant 0 : i32
    %c0_i32_0 = arith.constant 0 : i32
    %c0_i32_1 = arith.constant 0 : i32
    return %c0_i32, %c0_i32_0 : i32, i32
  }
  func.func @transform_3(%arg0: i32) -> (i32, i32) {
    %c0_i32 = arith.constant 0 : i32
    %c0_i32_0 = arith.constant 0 : i32
    %c0_i32_1 = arith.constant 0 : i32
    return %c0_i32, %c0_i32_0 : i32, i32
  }
  func.func @transform_4(%arg0: i32) -> (i32, i32) {
    %c0_i32 = arith.constant 0 : i32
    %c0_i32_0 = arith.constant 0 : i32
    %c0_i32_1 = arith.constant 0 : i32
    return %c0_i32, %c0_i32_0 : i32, i32
  }
  func.func @transform_5(%arg0: i32) -> (i32, i32) {
    %c0_i32 = arith.constant 0 : i32
    %c0_i32_0 = arith.constant 0 : i32
    %c0_i32_1 = arith.constant 0 : i32
    return %c0_i32, %c0_i32_0 : i32, i32
  }
  func.func @transform_6(%arg0: i32) -> (i32, i32) {
    %c0_i32 = arith.constant 0 : i32
    %c0_i32_0 = arith.constant 0 : i32
    %c0_i32_1 = arith.constant 0 : i32
    return %c0_i32, %c0_i32_0 : i32, i32
  }
  func.func @transform_7(%arg0: i32) -> (i32, i32, i32) {
    %c0_i32 = arith.constant 0 : i32
    %c0_i32_0 = arith.constant 0 : i32
    %c0_i32_1 = arith.constant 0 : i32
    return %arg0, %c0_i32, %c0_i32_0 : i32, i32, i32
  }
}

</mosaic_0001>

<bundles_post_ra>
// kernel: tpu_custom_call.1
= control target key start
LH: loop header
LB: loop body
LE: loop exit
PB: predicated region body
PF: predicated region fallthrough
CT: control target
= control target key end

     0   :  { %12 = vsyncpa [#allocation3], 0  ;;  %s2664_s0 = inlined_call_operand.vmem [shape: f32[2,4,128], index: 0, kind: input, shape index: {}]   ;;  %s2665_s1 = inlined_call_operand.vmem [shape: s32[2,1,896], index: 1, kind: input, shape index: {}]   ;;  %s2666_s2 = inlined_call_operand.vmem [shape: f32[64,4], index: 2, kind: input, shape index: {}]   ;;  %s2667_s3 = inlined_call_operand.vmem [shape: f32[32,1], index: 3, kind: input, shape index: {}]   ;;  %s2668_s4 = inlined_call_operand.vmem [shape: f32[32,32], index: 4, kind: input, shape index: {}]   ;;  %s2669_s5 = inlined_call_operand.vmem [shape: f32[32,32], index: 5, kind: input, shape index: {}]   ;;  %s2670_s6 = inlined_call_operand.vmem [shape: f32[32,1], index: 6, kind: input, shape index: {}]   ;;  %s2671_s7 = inlined_call_operand.hbm [shape: f32[2,32,128], index: 7, kind: output, shape index: {}]  }
   0x1   :  { %14 = vsyncpa [#allocation3 + $0x1], 0  ;;  %s1889_s24 = smov 0   ;;  %s1891_s25 = smov 0  }
   0x2   :  { %s1893_s26 = smov 0   ;;  %s1895_s27 = smov 0  }
   0x3 LB: > { %s1910_s28 = sadd.s32 4294967295, %s1843_s27   ;;  %s1457_s29 = sadd.s32 4294967294, %s1843_s27   ;;  %s1843_s27 = sphi %s1895_s27, %s2677_s27   ;;  %s1839_s26 = sphi %s1893_s26, %s2676_s26   ;;  %s1835_s25 = sphi %s1891_s25, %s2675_s25   ;;  %s1831_s24 = sphi %s1889_s24, %s2674_s24  }
   0x4   : > { %s1914_s30 = sadd.s32 1, %s1843_s27   ;;  %s184_s8 = sadd.s32 1, %s1839_s26 }
   0x5   : > { %s181_s9 = ssub.s32 %s1843_s27, %s1914_s30  ;;  %p194_p0 = scmp.ne.s32.totalorder %s1839_s26, %s1835_s25 }
   0x6   : > { %p182_p1 = scmp.eq.s32.totalorder %s181_s9, 0  ;;  %p195_p2 = scmp.eq.s32.totalorder %s1910_s28, 1 }
   0x7   : > { %p200_p3 = scmp.ne.s32.totalorder %s1835_s25, %s1831_s24  ;;  %p201_p4 = scmp.eq.s32.totalorder %s1457_s29, 1 }
   0x8   : > { %s1925_s10 = scalar_select %p182_p1, %s1839_s26, %s184_s8  }
   0x9   : > { %p1927_p5 = por %p195_p2, %p194_p0  ;;  %p1931_p6 = por %p201_p4, %p200_p3 }
   0xa   : > { %p1460_p7 = scmp.ge.s32.totalorder %s1843_s27, 1  ;;  %p248_p8 = scmp.lt.s32.totalorder %s1843_s27, 3 }
   0xc   : > { %p249_p9 = pnand %p1460_p7, %p248_p8 }
   0xd   : > { %p283_p10 = scmp.lt.s32.totalorder (!%p249_p9), %s1910_s28, 1  ;;  %s280_s15 = sand.u32 (!%p249_p9), 1, %s1835_s25  }
   0xe   : > { %252 = sbr.rel (%p249_p9) target bundleno = 710 (0x2c6), region = 48  ;;  %s1461_s16 = sshll.u32 (!%p249_p9), %s280_s15, 5 }
   0xf   : > { %s1733_s18 = sshll.u32 (!%p249_p9), %s1910_s28, 5 }
  0x13   : > { %s284_s13 = scalar_select %p283_p10, %s1910_s28, 1  ;;  %vm325_vm0 = vcmask 1043456   ;;  %v292_v0 = vld [vmem:[%s2666_s2] sm:$0xff]  ;;  %vm300_vm1 = vcmask 31744   ;;  %v293_v2 = vld [vmem:[%s2666_s2 + $0x8] sm:$0xff]  ;;  %v294_v3 = vld [vmem:[%s2666_s2 + $0x10] sm:$0xff]  ;;  %v371_v10 = vlaneseq }
  0x14   : > { %v295_v4 = vld [vmem:[%s2666_s2 + $0x18] sm:$0xff]  ;;  %v296_v5 = vld [vmem:[%s2666_s2 + $0x20] sm:$0xff]  ;;  %v297_v6 = vld [vmem:[%s2666_s2 + $0x28] sm:$0xff]  ;;  %v1845_v19 = vmov 1.0   ;;  %v1846_v37 = vmov 0  }
  0x15   : > { %s1462_s14 = sshll.u32 %s284_s13, 2  ;;  %v298_v7 = vld [vmem:[%s2666_s2 + $0x30] sm:$0xff]  ;;  %v299_v8 = vld [vmem:[%s2666_s2 + $0x38] sm:$0xff]  ;;  %s1734_s21 = smul.u32 7, %s284_s13  ;;  %v1991_v15 = vshrl.u32 %v371_v10, 7  ;;  %v963_v36 = vld [vmem:[%s2667_s3 + $0x8] sm:$0xff]  ;;  %1779 = vset.pattern.permute.xlu1 %v1846_v37  ;;  %1778 = vset.pattern.permute.xlu0 %v1846_v37 }
  0x16   : > { %s286_s17 = scalar_lea.vmem %s2664_s0, %s1462_s14  ;;  %973 = vperm.xlu1 %1779, %v963_v36   ;;  %v962_v39 = vld [vmem:[%s2667_s3] sm:$0xff]  ;;  %1780 = vset.pattern.permute.xlu2 %v1846_v37  ;;  %v965_v41 = vld [vmem:[%s2667_s3 + $0x18] sm:$0xff]  ;;  %v964_v43 = vld [vmem:[%s2667_s3 + $0x10] sm:$0xff]  ;;  %s1801_s14 = scalar_lea.hbm %s2671_s7, 64 }
  0x17   : > { %v291_v1 = vld [vmem:[%s286_s17] sm:$0xf]  ;;  %s290_s29 = scalar_lea.vmem %s2665_s1, %s1734_s21  ;;  %v1994_v16 = vadd.s32 120, %v1991_v15  ;;  %v1997_v17 = vadd.s32 112, %v1991_v15  ;;  %v2000_v18 = vadd.s32 104, %v1991_v15  ;;  %v2035_v20 = vadd.s32 96, %v1991_v15  ;;  %983 = vperm.xlu0 %1778, %v965_v41   ;;  %s1379_s21 = scalar_lea.hbm %s2671_s7, %s1733_s18 }
  0x18   : > { %1463 = vmatpush.msk.msra.mxu0 %vm325_vm0, %v291_v1  ;;  %v1977_v9 = vld [vmem:[%s290_s29] sm:$0xff]  ;;  %v2048_v21 = vadd.s32 88, %v1991_v15  ;;  %v2055_v22 = vadd.s32 80, %v1991_v15  ;;  %v2058_v23 = vadd.s32 72, %v1991_v15  ;;  %v2095_v24 = vadd.s32 64, %v1991_v15  ;;  %v1337_v45 = vld [vmem:[%s2670_s6 + $0x10] sm:$0xff] }
  0x19   : > { %1464 = vmatmul.msk.f32.vlgmr.msra.gmra.mxu0 %vm300_vm1, %v292_v0  ;;  %v1980_v11 = vperm.slane %v1977_v9, 0  ;;  %v1983_v12 = vperm.slane %v1977_v9, 1  ;;  %v1986_v13 = vperm.slane %v1977_v9, 2  ;;  %v1989_v14 = vperm.slane %v1977_v9, 6  ;;  %v1338_v47 = vld [vmem:[%s2670_s6 + $0x18] sm:$0xff]  ;;  %s282_s17 = scalar_lea.vmem [#allocation2], %s1461_s16 }
  0x1a   : > { %v2108_v25 = vadd.s32 56, %v1991_v15  ;;  %v2115_v26 = vadd.s32 48, %v1991_v15  ;;  %v2118_v27 = vadd.s32 40, %v1991_v15  ;;  %v2155_v28 = vadd.s32 32, %v1991_v15  ;;  %s1380_s22 = sshll.u32 %s282_s17, 4  ;;  %s1382_s23 = sshll.u32 %s1379_s21, 4  ;;  %s1381_s22 = int_to_ptr.vmem [resolvable:$true] %s1380_s22  ;;  %s1383_s23 = int_to_ptr.hbm [resolvable:$true] %s1382_s23 }
  0x1b   : > { %vm500_vm2 = vcmp.eq.s32.totalorder %v1994_v16, %v1980_v11  ;;  %vm501_vm3 = vcmp.eq.s32.totalorder %v1994_v16, %v1983_v12  ;;  %vm502_vm4 = vcmp.eq.s32.totalorder %v1994_v16, %v1986_v13  ;;  %vm506_vm5 = vcmp.eq.s32.totalorder %v1994_v16, %v1989_v14  ;;  %s1368_s29 = scalar_lea.sflag [#allocation3], %s280_s15  ;;  %s1795_s28 = sshra.s32 %s1383_s23, 4  ;;  %s1796_s28 = int_to_ptr.hbm [resolvable:$true] %s1795_s28 }
  0x1c   : > { %1584 = vmatpush.msk.msra.mxu1 %vm500_vm2, %v1845_v19  ;;  %1600 = vmatpush.msk.msra.mxu2 %vm501_vm3, %v1845_v19  ;;  %vm493_vm6 = vcmp.eq.s32.totalorder %v1997_v17, %v1980_v11  ;;  %vm494_vm7 = vcmp.eq.s32.totalorder %v1997_v17, %v1983_v12  ;;  %vm495_vm8 = vcmp.eq.s32.totalorder %v1997_v17, %v1986_v13  ;;  %v2168_v29 = vadd.s32 24, %v1991_v15  ;;  %s1797_s13 = scalar_lea.hbm %s1796_s28, 32  ;;  %p1802_p0 = scmp.lt.s32.totalorder %s1796_s28, %s2671_s7 }
  0x1d   : > { %1616 = vmatpush.msk.msra.mxu3 %vm502_vm4, %v1845_v19  ;;  %1680 = vmatpush.msk.msrb.mxu0 %vm506_vm5, %v1845_v19  ;;  %vm499_vm9 = vcmp.eq.s32.totalorder %v1997_v17, %v1989_v14  ;;  %vm486_vm10 = vcmp.eq.s32.totalorder %v2000_v18, %v1980_v11  ;;  %vm487_vm11 = vcmp.eq.s32.totalorder %v2000_v18, %v1983_v12  ;;  %v2175_v30 = vadd.s32 16, %v1991_v15  ;;  %p1798_p11 = scmp.ne.s32.totalorder %s1796_s28, %s1797_s13  ;;  %p1803_p1 = scmp.lt.s32.totalorder %s1801_s14, %s1797_s13 }
  0x1e   : > { %1585 = vmatpush.msk.msra.mxu1 %vm493_vm6, %v1845_v19  ;;  %1601 = vmatpush.msk.msra.mxu2 %vm494_vm7, %v1845_v19  ;;  %vm488_vm12 = vcmp.eq.s32.totalorder %v2000_v18, %v1986_v13  ;;  %vm492_vm13 = vcmp.eq.s32.totalorder %v2000_v18, %v1989_v14  ;;  %vm479_vm14 = vcmp.eq.s32.totalorder %v2035_v20, %v1980_v11  ;;  %v2178_v31 = vadd.s32 8, %v1991_v15 }
  0x1f   : > { %1617 = vmatpush.msk.msra.mxu3 %vm495_vm8, %v1845_v19  ;;  %1681 = vmatpush.msk.msrb.mxu0 %vm499_vm9, %v1845_v19  ;;  %vm480_vm15 = vcmp.eq.s32.totalorder %v2035_v20, %v1983_v12  ;;  %vm481_vm0 = vcmp.eq.s32.totalorder %v2035_v20, %v1986_v13  ;;  %vm472_vm2 = vcmp.eq.s32.totalorder %v2048_v21, %v1980_v11  ;;  %v2215_v32 = vperm.slane %v1977_v9, 3  ;;  %p1799_p12 = pnand %p1798_p11, %p1927_p5  ;;  %p1804_p2 = por %p1803_p1, %p1802_p0 }
  0x20   : > { %1586 = vmatpush.msk.msra.mxu1 %vm486_vm10, %v1845_v19  ;;  %1602 = vmatpush.msk.msra.mxu2 %vm487_vm11, %v1845_v19  ;;  %vm473_vm3 = vcmp.eq.s32.totalorder %v2048_v21, %v1983_v12  ;;  %vm474_vm4 = vcmp.eq.s32.totalorder %v2048_v21, %v1986_v13  ;;  %vm478_vm5 = vcmp.eq.s32.totalorder %v2048_v21, %v1989_v14  ;;  %v2218_v33 = vperm.slane %v1977_v9, 4 }
  0x21   : > { %1465 = vmatmul.msk.f32.gmra.mxu0 %vm300_vm1, %v293_v2  ;;  %1618 = vmatpush.msk.msra.mxu3 %vm488_vm12, %v1845_v19  ;;  %vm465_vm6 = vcmp.eq.s32.totalorder %v2055_v22, %v1980_v11  ;;  %vm466_vm7 = vcmp.eq.s32.totalorder %v2055_v22, %v1983_v12  ;;  %vm467_vm8 = vcmp.eq.s32.totalorder %v2055_v22, %v1986_v13  ;;  %v2221_v34 = vperm.slane %v1977_v9, 5  ;;  %p1800_p13 = pneg %p1799_p12 }
  0x22   : > { %1682 = vmatpush.msk.msrb.mxu0 %vm492_vm13, %v1845_v19  ;;  %1587 = vmatpush.msk.msra.mxu1 %vm479_vm14, %v1845_v19  ;;  %vm471_vm9 = vcmp.eq.s32.totalorder %v2055_v22, %v1989_v14  ;;  %vm458_vm10 = vcmp.eq.s32.totalorder %v2058_v23, %v1980_v11  ;;  %vm459_vm11 = vcmp.eq.s32.totalorder %v2058_v23, %v1983_v12 }
  0x23   : > { %1603 = vmatpush.msk.msra.mxu2 %vm480_vm15, %v1845_v19  ;;  %1619 = vmatpush.msk.msra.mxu3 %vm481_vm0, %v1845_v19  ;;  %vm460_vm12 = vcmp.eq.s32.totalorder %v2058_v23, %v1986_v13  ;;  %vm464_vm13 = vcmp.eq.s32.totalorder %v2058_v23, %v1989_v14  ;;  %vm451_vm14 = vcmp.eq.s32.totalorder %v2095_v24, %v1980_v11  ;;  %p1805_p3 = pnand %p1804_p2, %p1800_p13 }
  0x24   : > { %1588 = vmatpush.msk.msra.mxu1 %vm472_vm2, %v1845_v19  ;;  %vm452_vm15 = vcmp.eq.s32.totalorder %v2095_v24, %v1983_v12  ;;  %vm453_vm0 = vcmp.eq.s32.totalorder %v2095_v24, %v1986_v13  ;;  %vm444_vm2 = vcmp.eq.s32.totalorder %v2108_v25, %v1980_v11  ;;  %968 = vperm.xlu1 %1779, %v962_v39  }
  0x25   : > { %1604 = vmatpush.msk.msra.mxu2 %vm473_vm3, %v1845_v19  ;;  %1620 = vmatpush.msk.msra.mxu3 %vm474_vm4, %v1845_v19  ;;  %vm445_vm3 = vcmp.eq.s32.totalorder %v2108_v25, %v1983_v12  ;;  %vm446_vm4 = vcmp.eq.s32.totalorder %v2108_v25, %v1986_v13 }
  0x26   : > { %1589 = vmatpush.msk.msra.mxu1 %vm465_vm6, %v1845_v19  ;;  %vm437_vm6 = vcmp.eq.s32.totalorder %v2115_v26, %v1980_v11  ;;  %978 = vperm.xlu0 %1778, %v964_v43  }
  0x27   : > { %1605 = vmatpush.msk.msra.mxu2 %vm466_vm7, %v1845_v19  ;;  %1621 = vmatpush.msk.msra.mxu3 %vm467_vm8, %v1845_v19  ;;  %vm438_vm7 = vcmp.eq.s32.totalorder %v2115_v26, %v1983_v12  ;;  %vm439_vm8 = vcmp.eq.s32.totalorder %v2115_v26, %v1986_v13 }
  0x28   : > { %1590 = vmatpush.msk.msra.mxu1 %vm458_vm10, %v1845_v19  ;;  %vm430_vm10 = vcmp.eq.s32.totalorder %v2118_v27, %v1980_v11 }
  0x29   : > { %1466 = vmatmul.msk.f32.gmra.mxu0 %vm300_vm1, %v294_v3  ;;  %1606 = vmatpush.msk.msra.mxu2 %vm459_vm11, %v1845_v19  ;;  %vm431_vm11 = vcmp.eq.s32.totalorder %v2118_v27, %v1983_v12 }
  0x2a   : > { %1622 = vmatpush.msk.msra.mxu3 %vm460_vm12, %v1845_v19  ;;  %1591 = vmatpush.msk.msra.mxu1 %vm451_vm14, %v1845_v19  ;;  %vm432_vm12 = vcmp.eq.s32.totalorder %v2118_v27, %v1986_v13  ;;  %vm423_vm14 = vcmp.eq.s32.totalorder %v2155_v28, %v1980_v11 }
  0x2b   : > { %1607 = vmatpush.msk.msra.mxu2 %vm452_vm15, %v1845_v19  ;;  %vm424_vm15 = vcmp.eq.s32.totalorder %v2155_v28, %v1983_v12 }
  0x2c   : > { %1623 = vmatpush.msk.msra.mxu3 %vm453_vm0, %v1845_v19  ;;  %1592 = vmatpush.msk.msra.mxu1 %vm444_vm2, %v1845_v19  ;;  %vm425_vm0 = vcmp.eq.s32.totalorder %v2155_v28, %v1986_v13  ;;  %vm416_vm2 = vcmp.eq.s32.totalorder %v2168_v29, %v1980_v11 }
  0x2d   : > { %1608 = vmatpush.msk.msra.mxu2 %vm445_vm3, %v1845_v19  ;;  %vm417_vm3 = vcmp.eq.s32.totalorder %v2168_v29, %v1983_v12  ;;  %1356 = vperm.xlu1 %1779, %v1338_v47  }
  0x2e   : > { %1624 = vmatpush.msk.msra.mxu3 %vm446_vm4, %v1845_v19  ;;  %1593 = vmatpush.msk.msra.mxu1 %vm437_vm6, %v1845_v19  ;;  %vm418_vm4 = vcmp.eq.s32.totalorder %v2168_v29, %v1986_v13  ;;  %vm409_vm6 = vcmp.eq.s32.totalorder %v2175_v30, %v1980_v11 }
  0x2f   : > { %1609 = vmatpush.msk.msra.mxu2 %vm438_vm7, %v1845_v19  ;;  %vm410_vm7 = vcmp.eq.s32.totalorder %v2175_v30, %v1983_v12  ;;  %1351 = vperm.xlu0 %1778, %v1337_v45  }
  0x30   : > { %1625 = vmatpush.msk.msra.mxu3 %vm439_vm8, %v1845_v19  ;;  %1594 = vmatpush.msk.msra.mxu1 %vm430_vm10, %v1845_v19  ;;  %vm411_vm8 = vcmp.eq.s32.totalorder %v2175_v30, %v1986_v13  ;;  %vm402_vm10 = vcmp.eq.s32.totalorder %v2178_v31, %v1980_v11 }
  0x31   : > { %1467 = vmatmul.msk.f32.gmra.mxu0 %vm300_vm1, %v295_v4  ;;  %1610 = vmatpush.msk.msra.mxu2 %vm431_vm11, %v1845_v19  ;;  %vm403_vm11 = vcmp.eq.s32.totalorder %v2178_v31, %v1983_v12 }
  0x32   : > { %1626 = vmatpush.msk.msra.mxu3 %vm432_vm12, %v1845_v19  ;;  %1595 = vmatpush.msk.msra.mxu1 %vm423_vm14, %v1845_v19  ;;  %vm404_vm12 = vcmp.eq.s32.totalorder %v2178_v31, %v1986_v13  ;;  %vm395_vm14 = vcmp.eq.s32.totalorder %v1991_v15, %v1980_v11 }
  0x33   : > { %1611 = vmatpush.msk.msra.mxu2 %vm424_vm15, %v1845_v19  ;;  %vm396_vm15 = vcmp.eq.s32.totalorder %v1991_v15, %v1983_v12 }
  0x34   : > { %1627 = vmatpush.msk.msra.mxu3 %vm425_vm0, %v1845_v19  ;;  %1596 = vmatpush.msk.msra.mxu1 %vm416_vm2, %v1845_v19  ;;  %vm397_vm0 = vcmp.eq.s32.totalorder %v1991_v15, %v1986_v13  ;;  %vm503_vm2 = vcmp.eq.s32.totalorder %v1994_v16, %v2215_v32 }
  0x35   : > { %1612 = vmatpush.msk.msra.mxu2 %vm417_vm3, %v1845_v19  ;;  %vm504_vm3 = vcmp.eq.s32.totalorder %v1994_v16, %v2218_v33 }
  0x36   : > { %1628 = vmatpush.msk.msra.mxu3 %vm418_vm4, %v1845_v19  ;;  %1597 = vmatpush.msk.msra.mxu1 %vm409_vm6, %v1845_v19  ;;  %vm505_vm4 = vcmp.eq.s32.totalorder %v1994_v16, %v2221_v34  ;;  %vm497_vm6 = vcmp.eq.s32.totalorder %v1997_v17, %v2218_v33 }
  0x37   : > { %1613 = vmatpush.msk.msra.mxu2 %vm410_vm7, %v1845_v19  ;;  %vm498_vm7 = vcmp.eq.s32.totalorder %v1997_v17, %v2221_v34 }
  0x38   : > { %1629 = vmatpush.msk.msra.mxu3 %vm411_vm8, %v1845_v19  ;;  %1598 = vmatpush.msk.msra.mxu1 %vm402_vm10, %v1845_v19  ;;  %vm489_vm8 = vcmp.eq.s32.totalorder %v2000_v18, %v2215_v32  ;;  %vm491_vm10 = vcmp.eq.s32.totalorder %v2000_v18, %v2221_v34 }
  0x39   : > { %1468 = vmatmul.msk.f32.gmra.mxu0 %vm300_vm1, %v296_v5  ;;  %1614 = vmatpush.msk.msra.mxu2 %vm403_vm11, %v1845_v19  ;;  %vm482_vm11 = vcmp.eq.s32.totalorder %v2035_v20, %v2215_v32 }
  0x3a   : > { %1630 = vmatpush.msk.msra.mxu3 %vm404_vm12, %v1845_v19  ;;  %1599 = vmatpush.msk.msra.mxu1 %vm395_vm14, %v1845_v19  ;;  %vm483_vm12 = vcmp.eq.s32.totalorder %v2035_v20, %v2218_v33  ;;  %vm475_vm14 = vcmp.eq.s32.totalorder %v2048_v21, %v2215_v32 }
  0x3b   : > { %1615 = vmatpush.msk.msra.mxu2 %vm396_vm15, %v1845_v19  ;;  %vm476_vm15 = vcmp.eq.s32.totalorder %v2048_v21, %v2218_v33 }
  0x3c   : > { %1631 = vmatpush.msk.msra.mxu3 %vm397_vm0, %v1845_v19  ;;  %1632 = vmatpush.msk.msrb.mxu1 %vm503_vm2, %v1845_v19  ;;  %vm477_vm0 = vcmp.eq.s32.totalorder %v2048_v21, %v2221_v34  ;;  %vm469_vm2 = vcmp.eq.s32.totalorder %v2055_v22, %v2218_v33 }
  0x3d   : > { %1648 = vmatpush.msk.msrb.mxu2 %vm504_vm3, %v1845_v19  ;;  %vm470_vm3 = vcmp.eq.s32.totalorder %v2055_v22, %v2221_v34 }
  0x3e   : > { %1664 = vmatpush.msk.msrb.mxu3 %vm505_vm4, %v1845_v19  ;;  %vm461_vm4 = vcmp.eq.s32.totalorder %v2058_v23, %v2215_v32 }
  0x3f   : > { %1649 = vmatpush.msk.msrb.mxu2 %vm497_vm6, %v1845_v19  ;;  %vm463_vm6 = vcmp.eq.s32.totalorder %v2058_v23, %v2221_v34 }
  0x40   : > { %1665 = vmatpush.msk.msrb.mxu3 %vm498_vm7, %v1845_v19  ;;  %vm454_vm7 = vcmp.eq.s32.totalorder %v2095_v24, %v2215_v32 }
  0x41   : > { %1469 = vmatmul.msk.f32.gmra.mxu0 %vm300_vm1, %v297_v6 }
  0x42   : > { %1666 = vmatpush.msk.msrb.mxu3 %vm491_vm10, %v1845_v19  ;;  %vm447_vm10 = vcmp.eq.s32.totalorder %v2108_v25, %v2215_v32 }
  0x49   : > { %1470 = vmatmul.msk.f32.gmra.mxu0 %vm300_vm1, %v298_v7 }
  0x51   : > { %1471 = vmatmul.msk.f32.gmra.mxu0 %vm300_vm1, %v299_v8  ;;  %vm485_vm1 = vcmp.eq.s32.totalorder %v2035_v20, %v1989_v14 }
  0x52   : > { %1683 = vmatpush.msk.msrb.mxu0 %vm485_vm1, %v1845_v19  ;;  %vm457_vm1 = vcmp.eq.s32.totalorder %v2095_v24, %v1989_v14 }
  0x54   : > { %1684 = vmatpush.msk.msrb.mxu0 %vm478_vm5, %v1845_v19  ;;  %vm450_vm5 = vcmp.eq.s32.totalorder %v2108_v25, %v1989_v14 }
  0x56   : > { %1685 = vmatpush.msk.msrb.mxu0 %vm471_vm9, %v1845_v19  ;;  %vm443_vm9 = vcmp.eq.s32.totalorder %v2115_v26, %v1989_v14 }
  0x58   : > { %1686 = vmatpush.msk.msrb.mxu0 %vm464_vm13, %v1845_v19  ;;  %vm436_vm13 = vcmp.eq.s32.totalorder %v2118_v27, %v1989_v14 }
  0x5a   : > { %1687 = vmatpush.msk.msrb.mxu0 %vm457_vm1, %v1845_v19  ;;  %vm429_vm1 = vcmp.eq.s32.totalorder %v2155_v28, %v1989_v14 }
  0x5c   : > { %1688 = vmatpush.msk.msrb.mxu0 %vm450_vm5, %v1845_v19  ;;  %vm422_vm5 = vcmp.eq.s32.totalorder %v2168_v29, %v1989_v14 }
  0x5e   : > { %1689 = vmatpush.msk.msrb.mxu0 %vm443_vm9, %v1845_v19  ;;  %vm415_vm9 = vcmp.eq.s32.totalorder %v2175_v30, %v1989_v14 }
  0x60   : > { %1690 = vmatpush.msk.msrb.mxu0 %vm436_vm13, %v1845_v19  ;;  %vm408_vm13 = vcmp.eq.s32.totalorder %v2178_v31, %v1989_v14 }
  0x62   : > { %1691 = vmatpush.msk.msrb.mxu0 %vm429_vm1, %v1845_v19  ;;  %vm401_vm1 = vcmp.eq.s32.totalorder %v1991_v15, %v1989_v14 }
  0x64   : > { %1692 = vmatpush.msk.msrb.mxu0 %vm422_vm5, %v1845_v19  ;;  %vm496_vm5 = vcmp.eq.s32.totalorder %v1997_v17, %v2215_v32 }
  0x65   : > { %1633 = vmatpush.msk.msrb.mxu1 %vm496_vm5, %v1845_v19  ;;  %vm462_vm5 = vcmp.eq.s32.totalorder %v2058_v23, %v2218_v33 }
  0x66   : > { %1693 = vmatpush.msk.msrb.mxu0 %vm415_vm9, %v1845_v19  ;;  %vm490_vm9 = vcmp.eq.s32.totalorder %v2000_v18, %v2218_v33 }
  0x67   : > { %1634 = vmatpush.msk.msrb.mxu1 %vm489_vm8, %v1845_v19  ;;  %1650 = vmatpush.msk.msrb.mxu2 %vm490_vm9, %v1845_v19  ;;  %vm455_vm8 = vcmp.eq.s32.totalorder %v2095_v24, %v2218_v33  ;;  %vm456_vm9 = vcmp.eq.s32.totalorder %v2095_v24, %v2221_v34 }
  0x68   : > { %1694 = vmatpush.msk.msrb.mxu0 %vm408_vm13, %v1845_v19  ;;  %vm484_vm13 = vcmp.eq.s32.totalorder %v2035_v20, %v2221_v34 }
  0x69   : > { %1635 = vmatpush.msk.msrb.mxu1 %vm482_vm11, %v1845_v19  ;;  %1651 = vmatpush.msk.msrb.mxu2 %vm483_vm12, %v1845_v19  ;;  %vm448_vm11 = vcmp.eq.s32.totalorder %v2108_v25, %v2218_v33  ;;  %vm449_vm12 = vcmp.eq.s32.totalorder %v2108_v25, %v2221_v34 }
  0x6a   : > { %1695 = vmatpush.msk.msrb.mxu0 %vm401_vm1, %v1845_v19  ;;  %1667 = vmatpush.msk.msrb.mxu3 %vm484_vm13, %v1845_v19  ;;  %vm468_vm1 = vcmp.eq.s32.totalorder %v2055_v22, %v2215_v32  ;;  %vm440_vm13 = vcmp.eq.s32.totalorder %v2115_v26, %v2215_v32 }
  0x6b   : > { %1636 = vmatpush.msk.msrb.mxu1 %vm475_vm14, %v1845_v19  ;;  %1652 = vmatpush.msk.msrb.mxu2 %vm476_vm15, %v1845_v19  ;;  %vm441_vm14 = vcmp.eq.s32.totalorder %v2115_v26, %v2218_v33  ;;  %vm442_vm15 = vcmp.eq.s32.totalorder %v2115_v26, %v2221_v34 }
  0x6c   : > { %1668 = vmatpush.msk.msrb.mxu3 %vm477_vm0, %v1845_v19  ;;  %vm433_vm0 = vcmp.eq.s32.totalorder %v2118_v27, %v2215_v32 }
  0x6d   : > { %1637 = vmatpush.msk.msrb.mxu1 %vm468_vm1, %v1845_v19  ;;  %1653 = vmatpush.msk.msrb.mxu2 %vm469_vm2, %v1845_v19  ;;  %vm434_vm1 = vcmp.eq.s32.totalorder %v2118_v27, %v2218_v33  ;;  %vm435_vm2 = vcmp.eq.s32.totalorder %v2118_v27, %v2221_v34 }
  0x6e   : > { %1669 = vmatpush.msk.msrb.mxu3 %vm470_vm3, %v1845_v19  ;;  %vm426_vm3 = vcmp.eq.s32.totalorder %v2155_v28, %v2215_v32 }
  0x6f   : > { %1638 = vmatpush.msk.msrb.mxu1 %vm461_vm4, %v1845_v19  ;;  %1654 = vmatpush.msk.msrb.mxu2 %vm462_vm5, %v1845_v19  ;;  %vm427_vm4 = vcmp.eq.s32.totalorder %v2155_v28, %v2218_v33  ;;  %vm428_vm5 = vcmp.eq.s32.totalorder %v2155_v28, %v2221_v34 }
  0x70   : > { %1670 = vmatpush.msk.msrb.mxu3 %vm463_vm6, %v1845_v19  ;;  %vm419_vm6 = vcmp.eq.s32.totalorder %v2168_v29, %v2215_v32 }
  0x71   : > { %1639 = vmatpush.msk.msrb.mxu1 %vm454_vm7, %v1845_v19  ;;  %1655 = vmatpush.msk.msrb.mxu2 %vm455_vm8, %v1845_v19  ;;  %vm420_vm7 = vcmp.eq.s32.totalorder %v2168_v29, %v2218_v33  ;;  %vm421_vm8 = vcmp.eq.s32.totalorder %v2168_v29, %v2221_v34 }
  0x72   : > { %1671 = vmatpush.msk.msrb.mxu3 %vm456_vm9, %v1845_v19  ;;  %vm412_vm9 = vcmp.eq.s32.totalorder %v2175_v30, %v2215_v32 }
  0x73   : > { %1640 = vmatpush.msk.msrb.mxu1 %vm447_vm10, %v1845_v19  ;;  %1656 = vmatpush.msk.msrb.mxu2 %vm448_vm11, %v1845_v19  ;;  %vm413_vm10 = vcmp.eq.s32.totalorder %v2175_v30, %v2218_v33  ;;  %vm414_vm11 = vcmp.eq.s32.totalorder %v2175_v30, %v2221_v34 }
  0x74   : > { %1672 = vmatpush.msk.msrb.mxu3 %vm449_vm12, %v1845_v19  ;;  %vm405_vm12 = vcmp.eq.s32.totalorder %v2178_v31, %v2215_v32 }
  0x75   : > { %1641 = vmatpush.msk.msrb.mxu1 %vm440_vm13, %v1845_v19  ;;  %1657 = vmatpush.msk.msrb.mxu2 %vm441_vm14, %v1845_v19  ;;  %vm406_vm13 = vcmp.eq.s32.totalorder %v2178_v31, %v2218_v33  ;;  %vm398_vm14 = vcmp.eq.s32.totalorder %v1991_v15, %v2215_v32 }
  0x76   : > { %1673 = vmatpush.msk.msrb.mxu3 %vm442_vm15, %v1845_v19  ;;  %vm407_vm15 = vcmp.eq.s32.totalorder %v2178_v31, %v2221_v34 }
  0x77   : > { %1642 = vmatpush.msk.msrb.mxu1 %vm433_vm0, %v1845_v19  ;;  %1658 = vmatpush.msk.msrb.mxu2 %vm434_vm1, %v1845_v19  ;;  %vm399_vm0 = vcmp.eq.s32.totalorder %v1991_v15, %v2218_v33  ;;  %vm400_vm1 = vcmp.eq.s32.totalorder %v1991_v15, %v2221_v34  ;;  %v2489_v34 = vld [vmem:[%s2668_s4] sm:$0xff] }
  0x78   : > { %1674 = vmatpush.msk.msrb.mxu3 %vm435_vm2, %v1845_v19  ;;  %vm1046_vm2 = vcmask 261120  }
  0x79   : > { %1643 = vmatpush.msk.msrb.mxu1 %vm426_vm3, %v1845_v19  ;;  %1659 = vmatpush.msk.msrb.mxu2 %vm427_vm4, %v1845_v19 }
  0x7a   : > { %1675 = vmatpush.msk.msrb.mxu3 %vm428_vm5, %v1845_v19 }
  0x7b   : > { %1644 = vmatpush.msk.msrb.mxu1 %vm419_vm6, %v1845_v19  ;;  %1660 = vmatpush.msk.msrb.mxu2 %vm420_vm7, %v1845_v19 }
  0x7c   : > { %1676 = vmatpush.msk.msrb.mxu3 %vm421_vm8, %v1845_v19 }
  0x7d   : > { %1645 = vmatpush.msk.msrb.mxu1 %vm412_vm9, %v1845_v19  ;;  %1661 = vmatpush.msk.msrb.mxu2 %vm413_vm10, %v1845_v19 }
  0x7e   : > { %1677 = vmatpush.msk.msrb.mxu3 %vm414_vm11, %v1845_v19 }
  0x7f   : > { %1646 = vmatpush.msk.msrb.mxu1 %vm405_vm12, %v1845_v19  ;;  %1662 = vmatpush.msk.msrb.mxu2 %vm406_vm13, %v1845_v19 }
  0x80   : > { %1678 = vmatpush.msk.msrb.mxu3 %vm407_vm15, %v1845_v19 }
  0x81   : > { %1647 = vmatpush.msk.msrb.mxu1 %vm398_vm14, %v1845_v19  ;;  %1663 = vmatpush.msk.msrb.mxu2 %vm399_vm0, %v1845_v19 }
  0x82   : > { %1679 = vmatpush.msk.msrb.mxu3 %vm400_vm1, %v1845_v19 }
  0x88   : > { %v2454_v60 = vpop.permute.xlu1 %973 }
  0x89   : > { %v2452_v56 = vpop.permute.xlu0 %983 }
  0x96   : > { %v2233_v35 = vpop.f32.mrf.mxu0  ;;  %v2464_v6 = vpop.permute.xlu1 %968 }
  0x98   : > { %v2459_v1 = vpop.permute.xlu0 %978 }
  0x9e   : > { %v2270_v38 = vpop.f32.mrf.mxu0 }
  0xa6   : > { %v2311_v40 = vpop.f32.mrf.mxu0 }
  0xae   : > { %v2352_v42 = vpop.f32.mrf.mxu0 }
  0xb6   : > { %v2399_v44 = vpop.f32.mrf.mxu0 }
  0xb7   : > { %747 = vmatmul.f32.vlgmr.msra.gmra.mxu1 %v2399_v44  ;;  %776 = vmatmul.f32.vlgmr.msra.gmra.mxu2 %v2399_v44 }
  0xb8   : > { %805 = vmatmul.f32.vlgmr.msra.gmra.mxu3 %v2399_v44  ;;  %921 = vmatmul.f32.vlgmr.msrb.gmra.mxu0 %v2399_v44 }
  0xbe   : > { %v2415_v46 = vpop.f32.mrf.mxu0 }
  0xbf   : > { %750 = vmatmul.f32.gmra.mxu1 %v2415_v46  ;;  %779 = vmatmul.f32.gmra.mxu2 %v2415_v46 }
  0xc0   : > { %808 = vmatmul.f32.gmra.mxu3 %v2415_v46  ;;  %924 = vmatmul.f32.gmra.mxu0 %v2415_v46 }
  0xc6   : > { %v2424_v48 = vpop.f32.mrf.mxu0 }
  0xc7   : > { %753 = vmatmul.f32.gmra.mxu1 %v2424_v48  ;;  %782 = vmatmul.f32.gmra.mxu2 %v2424_v48 }
  0xc8   : > { %811 = vmatmul.f32.gmra.mxu3 %v2424_v48  ;;  %927 = vmatmul.f32.gmra.mxu0 %v2424_v48 }
  0xce   : > { %v2430_v49 = vpop.f32.mrf.mxu0 }
  0xcf   : > { %756 = vmatmul.f32.gmra.mxu1 %v2430_v49  ;;  %785 = vmatmul.f32.gmra.mxu2 %v2430_v49 }
  0xd0   : > { %814 = vmatmul.f32.gmra.mxu3 %v2430_v49  ;;  %930 = vmatmul.f32.gmra.mxu0 %v2430_v49 }
  0xd7   : > { %834 = vmatmul.f32.vlgmr.msrb.gmra.mxu1 %v2399_v44  ;;  %863 = vmatmul.f32.vlgmr.msrb.gmra.mxu2 %v2399_v44 }
  0xd8   : > { %892 = vmatmul.f32.vlgmr.msrb.gmra.mxu3 %v2399_v44 }
  0xdf   : > { %837 = vmatmul.f32.gmra.mxu1 %v2415_v46  ;;  %866 = vmatmul.f32.gmra.mxu2 %v2415_v46 }
  0xe0   : > { %895 = vmatmul.f32.gmra.mxu3 %v2415_v46 }
  0xe7   : > { %840 = vmatmul.f32.gmra.mxu1 %v2424_v48  ;;  %869 = vmatmul.f32.gmra.mxu2 %v2424_v48 }
  0xe8   : > { %898 = vmatmul.f32.gmra.mxu3 %v2424_v48 }
  0xef   : > { %843 = vmatmul.f32.gmra.mxu1 %v2430_v49  ;;  %872 = vmatmul.f32.gmra.mxu2 %v2430_v49 }
  0xf0   : > { %901 = vmatmul.f32.gmra.mxu3 %v2430_v49 }
 0x134   : > { %v748_v50 = vpop.f32.mrf.mxu1 }
 0x135   : > { %v2448_v51 = vpop.f32.mrf.mxu0  ;;  %v934_v5 = vsub.f32 %v748_v50, %v2399_v44 }
 0x137   : > { %v986_v14 = vadd.f32 %v2464_v6, %v934_v5 }
 0x139   : > { %v1014_v30 = vmax.f32 %v986_v14, 0.0 }
 0x13a   : > { %v777_v52 = vpop.f32.mrf.mxu2 }
 0x13b   : > { %v806_v53 = vpop.f32.mrf.mxu3  ;;  %v935_v23 = vsub.f32 %v777_v52, %v2399_v44 }
 0x13c   : > { %v751_v54 = vpop.f32.mrf.mxu1  ;;  %v936_v27 = vsub.f32 %v806_v53, %v2399_v44 }
 0x13d   : > { %v2450_v55 = vpop.f32.mrf.mxu0  ;;  %v941_v3 = vsub.f32 %v751_v54, %v2415_v46  ;;  %v987_v39 = vadd.f32 %v2464_v6, %v935_v23 }
 0x13e   : > { %v988_v45 = vadd.f32 %v2464_v6, %v936_v27  ;;  %v947_v52 = vsub.f32 %v2450_v55, %v2415_v46 }
 0x13f   : > { %v993_v9 = vadd.f32 %v2454_v60, %v941_v3  ;;  %v2512_v3 = vld [vmem:[%s2668_s4 + $0x8] sm:$0xff] }
 0x140   : > { %v999_v55 = vadd.f32 %v2454_v60, %v947_v52 }
 0x141   : > { %v1021_v24 = vmax.f32 %v993_v9, 0.0 }
 0x142   : > { %v780_v57 = vpop.f32.mrf.mxu2 }
 0x143   : > { %v809_v58 = vpop.f32.mrf.mxu3  ;;  %v942_v15 = vsub.f32 %v780_v57, %v2415_v46 }
 0x144   : > { %v754_v59 = vpop.f32.mrf.mxu1  ;;  %v943_v19 = vsub.f32 %v809_v58, %v2415_v46 }
 0x145   : > { %v2456_v61 = vpop.f32.mrf.mxu0  ;;  %v948_v63 = vsub.f32 %v754_v59, %v2424_v48  ;;  %v994_v31 = vadd.f32 %v2454_v60, %v942_v15 }
 0x146   : > { %v995_v36 = vadd.f32 %v2454_v60, %v943_v19  ;;  %v954_v41 = vsub.f32 %v2456_v61, %v2424_v48  ;;  %v940_v61 = vsub.f32 %v2448_v51, %v2399_v44 }
 0x147   : > { %v1000_v8 = vadd.f32 %v2459_v1, %v948_v63  ;;  %v1022_v53 = vmax.f32 %v994_v31, 0.0 }
 0x148   : > { %v1023_v58 = vmax.f32 %v995_v36, 0.0  ;;  %v1006_v63 = vadd.f32 %v2459_v1, %v954_v41 }
 0x149   : > { %v1028_v18 = vmax.f32 %v1000_v8, 0.0 }
 0x14a   : > { %v783_v62 = vpop.f32.mrf.mxu2  ;;  %v1034_v51 = vmax.f32 %v1006_v63, 0.0 }
 0x14b   : > { %v812_v0 = vpop.f32.mrf.mxu3  ;;  %v949_v10 = vsub.f32 %v783_v62, %v2424_v48  ;;  %v1015_v62 = vmax.f32 %v987_v39, 0.0 }
 0x14c   : > { %v757_v2 = vpop.f32.mrf.mxu1  ;;  %v950_v12 = vsub.f32 %v812_v0, %v2424_v48  ;;  %v1016_v0 = vmax.f32 %v988_v45, 0.0 }
 0x14d   : > { %v955_v4 = vsub.f32 %v757_v2, %v2430_v49  ;;  %v931_v20 = vpop.f32.mrf.mxu0  ;;  %v1001_v25 = vadd.f32 %v2459_v1, %v949_v10 }
 0x14e   : > { %v1002_v28 = vadd.f32 %v2459_v1, %v950_v12  ;;  %v961_v32 = vsub.f32 %v931_v20, %v2430_v49 }
 0x14f   : > { %v1007_v7 = vadd.f32 %v2452_v56, %v955_v4  ;;  %v1029_v43 = vmax.f32 %v1001_v25, 0.0  ;;  %v992_v4 = vadd.f32 %v2464_v6, %v940_v61 }
 0x150   : > { %v1030_v47 = vmax.f32 %v1002_v28, 0.0  ;;  %v1013_v54 = vadd.f32 %v2452_v56, %v961_v32 }
 0x151   : > { %v1035_v11 = vmax.f32 %v1007_v7, 0.0  ;;  %v1027_v7 = vmax.f32 %v999_v55, 0.0  ;;  %v1020_v10 = vmax.f32 %v992_v4, 0.0 }
 0x152   : > { %v786_v13 = vpop.f32.mrf.mxu2  ;;  %v1041_v2 = vmax.f32 %v1013_v54, 0.0 }
 0x153   : > { %v956_v16 = vsub.f32 %v786_v13, %v2430_v49  ;;  %v815_v17 = vpop.f32.mrf.mxu3  ;;  %1071 = vmatpush.msra.mxu1 %v1035_v11  ;;  %v2524_v11 = vld [vmem:[%s2668_s4 + $0x10] sm:$0xff] }
 0x154   : > { %v957_v21 = vsub.f32 %v815_v17, %v2430_v49  ;;  %v2476_v22 = vpop.f32.mrf.mxu1 }
 0x155   : > { %v1008_v26 = vadd.f32 %v2452_v56, %v956_v16  ;;  %1072 = vmatpush.msra.mxu1 %v1028_v18  ;;  %v937_v18 = vsub.f32 %v2476_v22, %v2399_v44 }
 0x156   : > { %v1009_v29 = vadd.f32 %v2452_v56, %v957_v21  ;;  %v2542_v21 = vld [vmem:[%s2668_s4 + $0x18] sm:$0xff] }
 0x157   : > { %v1036_v33 = vmax.f32 %v1008_v26, 0.0  ;;  %1073 = vmatpush.msra.mxu1 %v1021_v24  ;;  %v989_v27 = vadd.f32 %v2464_v6, %v937_v18 }
 0x158   : > { %v1037_v37 = vmax.f32 %v1009_v29, 0.0 }
 0x159   : > { %1074 = vmatpush.msra.mxu1 %v1014_v30  ;;  %1100 = vmatpush.msra.mxu2 %v1036_v33 }
 0x15a   : > { %1129 = vmatpush.msra.mxu3 %v1037_v37  ;;  %v2496_v50 = vpop.f32.mrf.mxu2  ;;  %1696 = vmatmul.msk.f32.vlgmr.msra.gmra.mxu1 %vm1046_vm2, %v2489_v34 }
 0x15b   : > { %v2503_v57 = vpop.f32.mrf.mxu3  ;;  %1101 = vmatpush.msra.mxu2 %v1029_v43  ;;  %v938_v33 = vsub.f32 %v2496_v50, %v2399_v44 }
 0x15c   : > { %1130 = vmatpush.msra.mxu3 %v1030_v47  ;;  %v838_v59 = vpop.f32.mrf.mxu1  ;;  %v939_v41 = vsub.f32 %v2503_v57, %v2399_v44  ;;  %v1017_v47 = vmax.f32 %v989_v27, 0.0 }
 0x15d   : > { %1102 = vmatpush.msra.mxu2 %v1022_v53  ;;  %v944_v16 = vsub.f32 %v838_v59, %v2415_v46  ;;  %v990_v53 = vadd.f32 %v2464_v6, %v938_v33 }
 0x15e   : > { %1131 = vmatpush.msra.mxu3 %v1023_v58  ;;  %v991_v44 = vadd.f32 %v2464_v6, %v939_v41 }
 0x15f   : > { %1103 = vmatpush.msra.mxu2 %v1015_v62  ;;  %v996_v23 = vadd.f32 %v2454_v60, %v944_v16  ;;  %v1018_v57 = vmax.f32 %v990_v53, 0.0 }
 0x160   : > { %1132 = vmatpush.msra.mxu3 %v1016_v0  ;;  %1700 = vmatmul.msk.f32.vlgmr.msra.gmra.mxu2 %vm1046_vm2, %v2489_v34  ;;  %v1019_v58 = vmax.f32 %v991_v44, 0.0  ;;  %v1336_v44 = vld [vmem:[%s2670_s6 + $0x8] sm:$0xff] }
 0x161   : > { %1704 = vmatmul.msk.f32.vlgmr.msra.gmra.mxu3 %vm1046_vm2, %v2489_v34  ;;  %v1024_v36 = vmax.f32 %v996_v23, 0.0 }
 0x162   : > { %1245 = vmatpush.msrb.mxu3 %v1041_v2  ;;  %v867_v5 = vpop.f32.mrf.mxu2  ;;  %1697 = vmatmul.msk.f32.gmra.mxu1 %vm1046_vm2, %v2512_v3 }
 0x163   : > { %v896_v8 = vpop.f32.mrf.mxu3  ;;  %v945_v28 = vsub.f32 %v867_v5, %v2415_v46 }
 0x164   : > { %1246 = vmatpush.msrb.mxu3 %v1034_v51  ;;  %v841_v9 = vpop.f32.mrf.mxu1  ;;  %v946_v32 = vsub.f32 %v896_v8, %v2415_v46 }
 0x165   : > { %v951_v13 = vsub.f32 %v841_v9, %v2424_v48  ;;  %v997_v46 = vadd.f32 %v2454_v60, %v945_v28 }
 0x166   : > { %1247 = vmatpush.msrb.mxu3 %v1027_v7  ;;  %v998_v50 = vadd.f32 %v2454_v60, %v946_v32 }
 0x167   : > { %v1003_v19 = vadd.f32 %v2459_v1, %v951_v13 }
 0x168   : > { %1248 = vmatpush.msrb.mxu3 %v1020_v10  ;;  %1701 = vmatmul.msk.f32.gmra.mxu2 %vm1046_vm2, %v2512_v3  ;;  %v1026_v60 = vmax.f32 %v998_v50, 0.0 }
 0x169   : > { %1705 = vmatmul.msk.f32.gmra.mxu3 %vm1046_vm2, %v2512_v3  ;;  %v1031_v29 = vmax.f32 %v1003_v19, 0.0 }
 0x16a   : > { %v870_v12 = vpop.f32.mrf.mxu2  ;;  %1698 = vmatmul.msk.f32.gmra.mxu1 %vm1046_vm2, %v2524_v11 }
 0x16b   : > { %v899_v14 = vpop.f32.mrf.mxu3  ;;  %v952_v24 = vsub.f32 %v870_v12, %v2424_v48 }
 0x16c   : > { %v844_v15 = vpop.f32.mrf.mxu1  ;;  %v953_v26 = vsub.f32 %v899_v14, %v2424_v48 }
 0x16d   : > { %v958_v17 = vsub.f32 %v844_v15, %v2430_v49  ;;  %v1004_v37 = vadd.f32 %v2459_v1, %v952_v24 }
 0x16e   : > { %v1005_v43 = vadd.f32 %v2459_v1, %v953_v26 }
 0x16f   : > { %v1010_v20 = vadd.f32 %v2452_v56, %v958_v17  ;;  %v1032_v54 = vmax.f32 %v1004_v37, 0.0 }
 0x170   : > { %1702 = vmatmul.msk.f32.gmra.mxu2 %vm1046_vm2, %v2524_v11  ;;  %v1033_v1 = vmax.f32 %v1005_v43, 0.0 }
 0x171   : > { %v1038_v25 = vmax.f32 %v1010_v20, 0.0  ;;  %1706 = vmatmul.msk.f32.gmra.mxu3 %vm1046_vm2, %v2524_v11 }
 0x172   : > { %v873_v22 = vpop.f32.mrf.mxu2  ;;  %1699 = vmatmul.msk.f32.gmra.mxu1 %vm1046_vm2, %v2542_v21 }
 0x173   : > { %v959_v30 = vsub.f32 %v873_v22, %v2430_v49  ;;  %v902_v31 = vpop.f32.mrf.mxu3  ;;  %1158 = vmatpush.msra.mxu0 %v1038_v25 }
 0x174   : > { %v960_v48 = vsub.f32 %v902_v31, %v2430_v49 }
 0x175   : > { %v1011_v39 = vadd.f32 %v2452_v56, %v959_v30  ;;  %1159 = vmatpush.msra.mxu0 %v1031_v29 }
 0x176   : > { %v1012_v45 = vadd.f32 %v2452_v56, %v960_v48  ;;  %v1025_v56 = vmax.f32 %v997_v46, 0.0  ;;  %v1335_v46 = vld [vmem:[%s2670_s6] sm:$0xff] }
 0x177   : > { %v1039_v49 = vmax.f32 %v1011_v39, 0.0  ;;  %1160 = vmatpush.msra.mxu0 %v1024_v36  ;;  %1341 = vperm.xlu2 %1780, %v1335_v46  }
 0x178   : > { %v1040_v52 = vmax.f32 %v1012_v45, 0.0  ;;  %1703 = vmatmul.msk.f32.gmra.mxu2 %vm1046_vm2, %v2542_v21 }
 0x179   : > { %1161 = vmatpush.msra.mxu0 %v1017_v47  ;;  %1187 = vmatpush.msrb.mxu1 %v1039_v49 }
 0x17a   : > { %1216 = vmatpush.msrb.mxu2 %v1040_v52  ;;  %1707 = vmatmul.msk.f32.gmra.mxu3 %vm1046_vm2, %v2542_v21 }
 0x17b   : > { %1708 = vmatmul.msk.f32.vlgmr.msra.gmra.mxu0 %vm1046_vm2, %v2489_v34  ;;  %1188 = vmatpush.msrb.mxu1 %v1032_v54  ;;  %v1286_v54 = vld [vmem:[%s2669_s5] sm:$0xff] }
 0x17c   : > { %1217 = vmatpush.msrb.mxu2 %v1033_v1  ;;  %v1287_v1 = vld [vmem:[%s2669_s5 + $0x8] sm:$0xff] }
 0x17d   : > { %1189 = vmatpush.msrb.mxu1 %v1025_v56  ;;  %v1288_v56 = vld [vmem:[%s2669_s5 + $0x10] sm:$0xff] }
 0x17e   : > { %1218 = vmatpush.msrb.mxu2 %v1026_v60  ;;  %v1289_v60 = vld [vmem:[%s2669_s5 + $0x18] sm:$0xff] }
 0x17f   : > { %1190 = vmatpush.msrb.mxu1 %v1018_v57  ;;  %1346 = vperm.xlu2 %1780, %v1336_v44  }
 0x180   : > { %1219 = vmatpush.msrb.mxu2 %v1019_v58  ;;  %1712 = vmatmul.msk.f32.vlgmr.msrb.gmra.mxu1 %vm1046_vm2, %v2489_v34 }
 0x181   : > { %1716 = vmatmul.msk.f32.vlgmr.msrb.gmra.mxu2 %vm1046_vm2, %v2489_v34 }
 0x182   : > { %1720 = vmatmul.msk.f32.vlgmr.msrb.gmra.mxu3 %vm1046_vm2, %v2489_v34 }
 0x183   : > { %1709 = vmatmul.msk.f32.gmra.mxu0 %vm1046_vm2, %v2512_v3 }
 0x188   : > { %1713 = vmatmul.msk.f32.gmra.mxu1 %vm1046_vm2, %v2512_v3 }
 0x189   : > { %1717 = vmatmul.msk.f32.gmra.mxu2 %vm1046_vm2, %v2512_v3 }
 0x18a   : > { %1721 = vmatmul.msk.f32.gmra.mxu3 %vm1046_vm2, %v2512_v3 }
 0x18b   : > { %1710 = vmatmul.msk.f32.gmra.mxu0 %vm1046_vm2, %v2524_v11 }
 0x190   : > { %1714 = vmatmul.msk.f32.gmra.mxu1 %vm1046_vm2, %v2524_v11 }
 0x191   : > { %1718 = vmatmul.msk.f32.gmra.mxu2 %vm1046_vm2, %v2524_v11 }
 0x192   : > { %1722 = vmatmul.msk.f32.gmra.mxu3 %vm1046_vm2, %v2524_v11 }
 0x193   : > { %1711 = vmatmul.msk.f32.gmra.mxu0 %vm1046_vm2, %v2542_v21 }
 0x198   : > { %1715 = vmatmul.msk.f32.gmra.mxu1 %vm1046_vm2, %v2542_v21 }
 0x199   : > { %1719 = vmatmul.msk.f32.gmra.mxu2 %vm1046_vm2, %v2542_v21 }
 0x19a   : > { %1723 = vmatmul.msk.f32.gmra.mxu3 %vm1046_vm2, %v2542_v21 }
 0x1d1   : > { %v1342_v57 = vpop.permute.xlu2 %1341 }
 0x1d7   : > { %v1076_v6 = vpop.f32.mrf.mxu1 }
 0x1df   : > { %v1079_v34 = vpop.f32.mrf.mxu1 }
 0x1e3   : > { %v1105_v59 = vpop.f32.mrf.mxu2 }
 0x1e4   : > { %v1134_v61 = vpop.f32.mrf.mxu3  ;;  %v1262_v23 = vmax.f32 %v1076_v6, %v1105_v59 }
 0x1e6   : > { %v1266_v29 = vmax.f32 %v1262_v23, %v1134_v61  ;;  %v1347_v61 = vpop.permute.xlu2 %1346 }
 0x1e7   : > { %v1082_v62 = vpop.f32.mrf.mxu1 }
 0x1eb   : > { %v1108_v63 = vpop.f32.mrf.mxu2 }
 0x1ec   : > { %v1137_v0 = vpop.f32.mrf.mxu3  ;;  %v1263_v19 = vmax.f32 %v1079_v34, %v1108_v63 }
 0x1ee   : > { %v1267_v22 = vmax.f32 %v1263_v19, %v1137_v0 }
 0x1ef   : > { %v1085_v2 = vpop.f32.mrf.mxu1 }
 0x1f3   : > { %v1111_v55 = vpop.f32.mrf.mxu2 }
 0x1f4   : > { %v1140_v3 = vpop.f32.mrf.mxu3  ;;  %v1264_v16 = vmax.f32 %v1082_v62, %v1111_v55 }
 0x1f6   : > { %v1268_v24 = vmax.f32 %v1264_v16, %v1140_v3 }
 0x1f8   : > { %v1163_v51 = vpop.f32.mrf.mxu0 }
 0x1f9   : > { %v1270_v33 = vmax.f32 %v1266_v29, %v1163_v51 }
 0x1fb   : > { %v1114_v4 = vpop.f32.mrf.mxu2 }
 0x1fc   : > { %v1265_v17 = vmax.f32 %v1085_v2, %v1114_v4  ;;  %v1352_v2 = vpop.permute.xlu0 %1351 }
 0x1fd   : > { %v1143_v5 = vpop.f32.mrf.mxu3  ;;  %v1192_v7 = vpop.f32.mrf.mxu1 }
 0x1fe   : > { %v1269_v25 = vmax.f32 %v1265_v17, %v1143_v5  ;;  %v1274_v43 = vmax.f32 %v1270_v33, %v1192_v7 }
 0x200   : > { %v1166_v8 = vpop.f32.mrf.mxu0 }
 0x201   : > { %v1271_v30 = vmax.f32 %v1267_v22, %v1166_v8 }
 0x204   : > { %v1221_v9 = vpop.f32.mrf.mxu2 }
 0x205   : > { %v1195_v10 = vpop.f32.mrf.mxu1  ;;  %v1250_v11 = vpop.f32.mrf.mxu3  ;;  %v1278_v49 = vmax.f32 %v1274_v43, %v1221_v9 }
 0x206   : > { %v1275_v36 = vmax.f32 %v1271_v30, %v1195_v10 }
 0x207   : > { %v1282_v53 = vmax.f32 %v1278_v49, %v1250_v11 }
 0x208   : > { %v1169_v12 = vpop.f32.mrf.mxu0 }
 0x209   : > { %v1272_v27 = vmax.f32 %v1268_v24, %v1169_v12 }
 0x20c   : > { %v1224_v13 = vpop.f32.mrf.mxu2 }
 0x20d   : > { %v1253_v14 = vpop.f32.mrf.mxu3  ;;  %v1198_v15 = vpop.f32.mrf.mxu1  ;;  %v1279_v45 = vmax.f32 %v1275_v36, %v1224_v13 }
 0x20e   : > { %v1276_v31 = vmax.f32 %v1272_v27, %v1198_v15 }
 0x20f   : > { %v1283_v52 = vmax.f32 %v1279_v45, %v1253_v14 }
 0x210   : > { %v1172_v21 = vpop.f32.mrf.mxu0 }
 0x211   : > { %v1273_v28 = vmax.f32 %v1269_v25, %v1172_v21 }
 0x214   : > { %v1227_v18 = vpop.f32.mrf.mxu2 }
 0x215   : > { %v1256_v20 = vpop.f32.mrf.mxu3  ;;  %v1201_v26 = vpop.f32.mrf.mxu1  ;;  %v1280_v37 = vmax.f32 %v1276_v31, %v1227_v18 }
 0x216   : > { %v1277_v32 = vmax.f32 %v1273_v28, %v1201_v26 }
 0x217   : > { %v1284_v50 = vmax.f32 %v1280_v37, %v1256_v20 }
 0x21c   : > { %v1230_v48 = vpop.f32.mrf.mxu2 }
 0x21d   : > { %v1281_v39 = vmax.f32 %v1277_v32, %v1230_v48  ;;  %v1259_v41 = vpop.f32.mrf.mxu3 }
 0x21f   : > { %v1285_v47 = vmax.f32 %v1281_v39, %v1259_v41 }
 0x221   : > { %1314 = vmatpush.msrb.mxu0 %v1285_v47 }
 0x223   : > { %1315 = vmatpush.msrb.mxu0 %v1284_v50 }
 0x225   : > { %1316 = vmatpush.msrb.mxu0 %v1283_v52 }
 0x227   : > { %1317 = vmatpush.msrb.mxu0 %v1282_v53 }
 0x228   : > { %1724 = vmatmul.msk.f32.vlgmr.msrb.gmra.mxu0 %vm1046_vm2, %v1286_v54 }
 0x230   : > { %1725 = vmatmul.msk.f32.gmra.mxu0 %vm1046_vm2, %v1287_v1 }
 0x238   : > { %1726 = vmatmul.msk.f32.gmra.mxu0 %vm1046_vm2, %v1288_v56 }
 0x240   : > { %1727 = vmatmul.msk.f32.gmra.mxu0 %vm1046_vm2, %v1289_v60 }
 0x2a5   : > { %v1319_v58 = vpop.f32.mrf.mxu0 }
 0x2a6   : > { %v1331_v6 = vadd.f32 %v1319_v58, %v2233_v35 }
 0x2a8   : > { %v1359_v34 = vadd.f32 %v1342_v57, %v1331_v6 }
 0x2aa   : > { %1363 = vst [vmem:[%s282_s17] sm:$0xff] %v1359_v34 }
 0x2ad   : > { %v1322_v59 = vpop.f32.mrf.mxu0 }
 0x2ae   : > { %v1332_v62 = vadd.f32 %v1322_v59, %v2270_v38  ;;  %v1357_v38 = vpop.permute.xlu1 %1356 }
 0x2b0   : > { %v1360_v63 = vadd.f32 %v1347_v61, %v1332_v62 }
 0x2b2   : > { %1364 = vst [vmem:[%s282_s17 + $0x8] sm:$0xff] %v1360_v63 }
 0x2b5   : > { %v1325_v0 = vpop.f32.mrf.mxu0 }
 0x2b6   : > { %v1333_v55 = vadd.f32 %v1325_v0, %v2311_v40 }
 0x2b8   : > { %v1361_v3 = vadd.f32 %v1352_v2, %v1333_v55 }
 0x2ba   : > { %1365 = vst [vmem:[%s282_s17 + $0x10] sm:$0xff] %v1361_v3 }
 0x2bd   : > { %v1328_v35 = vpop.f32.mrf.mxu0 }
 0x2be   : > { %v1334_v51 = vadd.f32 %v1328_v35, %v2352_v42 }
 0x2c0   : > { %v1362_v4 = vadd.f32 %v1357_v38, %v1334_v51 }
 0x2c2   : > { %1366 = vst [vmem:[%s282_s17 + $0x18] sm:$0xff] %v1362_v4 }
 0x2c3   : > { %1808 = shalt.err (!%p1805_p3)
}
 0x2c4   : > { %s1847_s15 = smov 128   ;;  %s1848_s17 = smov 8  }
 0x2c5   : > { %1735 = dma.vmem_to_hbm [thread:$0]  (%p1927_p5), %s1381_s22, 512, %s1383_s23, %s1368_s29, %s1847_s15, %s1847_s15, %s1848_s17  }
 0x2c6 PF: > { %p1741_p4 = scmp.ge.s32.totalorder %s1843_s27, 2  ;;  %s1397_s19 = sand.u32 1, %s1831_s24  }
 0x2c7   : > { %s1398_s20 = scalar_lea.sflag [#allocation3], %s1397_s19 }
 0x2c8   : > { %p1738_p7 = pnand %p1741_p4, %p1931_p6 }
 0x2ca   : > { %p1739_p8 = pneg %p1738_p7 }
 0x2cc   : > { %1826 = dma.done.wait (%p1739_p8), %s1398_s20, 512  }
 0x2cd   : > { %1828 = vsyncadd (%p1739_p8), %s1398_s20, 4294966784  ;;  %p17_p9 = scmp.ge.s32.totalorder %s1914_s30, 4   ;;  %s2674_s24 = smov %s1835_s25 }
 0x2ce   : > { %s2675_s25 = smov %s1839_s26  ;;  %s2676_s26 = smov %s1925_s10 }
 0x2cf   : > { %s2677_s27 = smov %s1914_s30  ;;  %19 = sbr.rel (!%p17_p9) target bundleno = 3 (0x3), region = 86 }
 0x2d4   :  { %1404 = vsyncpa [#allocation3], 1 }
 0x2d5   :  { %1406 = vsyncpa [#allocation3 + $0x1], 1 }

</bundles_post_ra>
